<compile_context>
chip_gen: v7x
topology: tpu7x:2x2x1
jax: 0.10.0
libtpu: 0.0.40
codegen_flags: <defaults>
</compile_context>

<pallas_src>
import functools

import jax
import jax.numpy as jnp
from jax import lax
from jax.experimental import pallas as pl
from jax.experimental.pallas import tpu as pltpu

# Finite stand-in for -inf: real logits are bounded, so this never wins a max
# and exp(_NEG_BIG - max) underflows to exactly 0.  Also used as the data-folded
# sentinel in the padding feature lane of padded contrast rows.
_NEG_BIG = -1e30


def _round_up(x, m):
    return (x + m - 1) // m * m


def _logits_and_not_self(a_ref, b_ref, inv_tau):
    """(tm, tn) logits tile + boolean 'not the self-contrast column' tile."""
    i = pl.program_id(0)
    j = pl.program_id(1)
    # Contract over the feature dim directly (no materialized transpose); MXU
    # operands stay in their stored dtype (bf16 by default), f32 accumulation.
    s = lax.dot_general(a_ref[...], b_ref[...], (((1,), (1,)), ((), ())),
                        preferred_element_type=jnp.float32) * inv_tau
    grow = i * a_ref.shape[0] + lax.broadcasted_iota(jnp.int32, s.shape, 0)
    gcol = j * b_ref.shape[0] + lax.broadcasted_iota(jnp.int32, s.shape, 1)
    return s, grow != gcol


def _online_update(s, not_self, pos, out_ref, mmax, lsum, psum, pcnt, *, scale):
    """Streamed softmax denominator + positives accumulation + finalize."""
    j = pl.program_id(1)

    @pl.when(j == 0)
    def _init():
        mmax[...] = jnp.full(mmax.shape, _NEG_BIG, jnp.float32)
        lsum[...] = jnp.zeros_like(lsum)
        psum[...] = jnp.zeros_like(psum)
        pcnt[...] = jnp.zeros_like(pcnt)

    # Denominator logits: self column excluded here (padded columns are already
    # driven to a huge negative by the data-folded padding lane, so exp -> 0).
    s_den = jnp.where(not_self, s, _NEG_BIG)
    m_prev = mmax[...]
    m_new = jnp.maximum(m_prev, jnp.max(s_den, axis=1, keepdims=True))
    lsum[...] = (jnp.exp(m_prev - m_new) * lsum[...]
                 + jnp.sum(jnp.exp(s_den - m_new), axis=1, keepdims=True))
    mmax[...] = m_new

    # Positives: pos is 0 on the diagonal and on padded columns, so pos * s is
    # exact (0 * finite == 0) and reuses s without extra masked copies.
    psum[...] = psum[...] + jnp.sum(pos * s, axis=1, keepdims=True)
    pcnt[...] = pcnt[...] + jnp.sum(pos, axis=1, keepdims=True)

    @pl.when(j == pl.num_programs(1) - 1)
    def _finalize():
        log_denom = mmax[...] + jnp.log(lsum[...])
        mean_log_prob_pos = psum[...] / pcnt[...] - log_denom
        out_ref[...] = (-scale) * mean_log_prob_pos


def _supcon_labels_kernel(rl_ref, cl_ref, a_ref, b_ref, out_ref,
                          mmax, lsum, psum, pcnt, *, inv_tau, scale):
    """labels / SimCLR path: positives mask built in-kernel from label vectors."""
    s, not_self = _logits_and_not_self(a_ref, b_ref, inv_tau)
    pos = jnp.logical_and(rl_ref[...] == cl_ref[...], not_self).astype(jnp.float32)
    _online_update(s, not_self, pos, out_ref, mmax, lsum, psum, pcnt, scale=scale)


def _supcon_mask_kernel(a_ref, b_ref, mk_ref, out_ref,
                        mmax, lsum, psum, pcnt, *, inv_tau, scale):
    """user-supplied arbitrary mask path: streamed bf16 tiled mask (diag zeroed)."""
    s, not_self = _logits_and_not_self(a_ref, b_ref, inv_tau)
    pos = mk_ref[...].astype(jnp.float32)
    _online_update(s, not_self, pos, out_ref, mmax, lsum, psum, pcnt, scale=scale)


def self_supcon_loss(features, labels=None, mask=None, *,
                     tau=0.07, contrast_mode="all", base_temperature=0.07,
                     block_m=None, block_n=None, compute_dtype=jnp.bfloat16,
                     vmem_limit_bytes=40 * 1024 * 1024):
    """Pallas TPU implementation of Self_SupConLoss(tau, contrast_mode, base_temperature)."""
    features = jnp.asarray(features)
    if features.ndim < 3:
        raise ValueError("`features` needs to be [bsz, n_views, ...], "
                         "at least 3 dimensions are required")
    if features.ndim > 3:
        features = features.reshape(features.shape[0], features.shape[1], -1)
    bsz, n_views, d = features.shape

    if labels is not None and mask is not None:
        raise ValueError("Cannot define both `labels` and `mask`")

    contrast_count = n_views
    # torch.cat(torch.unbind(features, dim=1), dim=0): row v*bsz + b == features[b, v]
    contrast_feature = jnp.transpose(features, (1, 0, 2)).reshape(n_views * bsz, d)
    if contrast_mode == "one":
        anchor_feature = features[:, 0]
        anchor_count = 1
    elif contrast_mode == "all":
        anchor_feature = contrast_feature
        anchor_count = n_views
    else:
        raise ValueError("Unknown mode: {}".format(contrast_mode))

    na = anchor_count * bsz      # anchor rows
    nc = contrast_count * bsz    # contrast rows

    # ---- tile sizes ----
    row_align = 16               # works for bf16 (16,128) and f32 (8,128) sublane tiling
    if block_m is not None:
        assert block_m % 8 == 0
        tm = block_m
    else:
        na_a = _round_up(na, row_align)
        if na_a <= 2 * row_align:
            tm = na_a
        else:
            # >= 2 row tiles so the "parallel" axis feeds both v7x TensorCores.
            tm = min(512, _round_up((na_a + 1) // 2, row_align))
    if block_n is not None:
        assert block_n % 128 == 0
        tn = block_n
    else:
        tn = min(512, _round_up(nc, 128))

    na_pad = _round_up(na, tm)
    nc_pad = _round_up(nc, tn)
    has_col_pad = nc_pad != nc
    # One spare feature lane when contrast columns are padded (data-folded mask).
    d_pad = _round_up(d + (1 if has_col_pad else 0), 128)

    # ---- features: cast once to the MXU dtype, pad, fold the column-pad mask ----
    a = jnp.zeros((na_pad, d_pad), compute_dtype).at[:na, :d].set(
        anchor_feature.astype(compute_dtype))
    b = jnp.zeros((nc_pad, d_pad), compute_dtype).at[:nc, :d].set(
        contrast_feature.astype(compute_dtype))
    if has_col_pad:
        a = a.at[:, d].set(jnp.asarray(1.0, compute_dtype))
        b = b.at[nc:, d].set(jnp.asarray(_NEG_BIG, compute_dtype))

    grid = (na_pad // tm, nc_pad // tn)
    inv_tau = float(1.0 / tau)
    scale = float(tau / base_temperature)
    out_shape = jax.ShapeDtypeStruct((na_pad, 1), jnp.float32)
    feat_specs = [pl.BlockSpec((tm, d_pad), lambda i, j: (i, 0)),   # anchor rows
                  pl.BlockSpec((tn, d_pad), lambda i, j: (j, 0))]   # contrast rows
    out_spec = pl.BlockSpec((tm, 1), lambda i, j: (i, 0))
    scratch = [pltpu.VMEM((tm, 1), jnp.float32)] * 4
    cparams = pltpu.CompilerParams(
        dimension_semantics=("parallel", "arbitrary"),
        vmem_limit_bytes=vmem_limit_bytes)

    if mask is None:
        # labels path; labels=None degenerates to per-sample classes (SimCLR eye mask).
        if labels is None:
            lab = jnp.arange(bsz, dtype=jnp.int32)
        else:
            lab = jnp.asarray(labels, jnp.int32).reshape(-1)
            if lab.shape[0] != bsz:
                raise ValueError("Num of labels does not match num of features")
        col_sent = jnp.max(lab) + 1        # padded columns never match any anchor
        row_sent = col_sent + 1            # padded rows never match anything at all
        rl = jnp.full((na_pad, 1), row_sent, jnp.int32).at[:na, 0].set(
            jnp.tile(lab, anchor_count))
        cl = jnp.full((1, nc_pad), col_sent, jnp.int32).at[0, :nc].set(
            jnp.tile(lab, contrast_count))
        kernel = functools.partial(_supcon_labels_kernel, inv_tau=inv_tau, scale=scale)
        per_row = pl.pallas_call(
            kernel,
            out_shape=out_shape,
            grid_spec=pltpu.PrefetchScalarGridSpec(
                num_scalar_prefetch=0,
                grid=grid,
                in_specs=[pl.BlockSpec((tm, 1), lambda i, j: (i, 0)),   # row labels
                          pl.BlockSpec((1, tn), lambda i, j: (0, j))]   # col labels
                         + feat_specs,
                out_specs=out_spec,
                scratch_shapes=scratch),
            compiler_params=cparams,
        )(rl, cl, a, b)
    else:
        # Arbitrary user mask: stream the tiled positives mask (diag + padding
        # zeroed by the wrapper) as bf16 — half the bytes of the old f32 stream.
        mask_dtype = jnp.bfloat16 if tm % 16 == 0 else jnp.float32
        mask_b = jnp.asarray(mask, jnp.float32)
        mask_full = jnp.tile(mask_b, (anchor_count, contrast_count))
        not_self = 1.0 - (jnp.arange(na)[:, None] == jnp.arange(nc)[None, :]
                          ).astype(jnp.float32)
        mask_full = mask_full * not_self
        mk = jnp.zeros((na_pad, nc_pad), mask_dtype).at[:na, :nc].set(
            mask_full.astype(mask_dtype))
        kernel = functools.partial(_supcon_mask_kernel, inv_tau=inv_tau, scale=scale)
        per_row = pl.pallas_call(
            kernel,
            out_shape=out_shape,
            grid_spec=pltpu.PrefetchScalarGridSpec(
                num_scalar_prefetch=0,
                grid=grid,
                in_specs=feat_specs + [pl.BlockSpec((tm, tn), lambda i, j: (i, j))],
                out_specs=out_spec,
                scratch_shapes=scratch),
            compiler_params=cparams,
        )(a, b, mk)

    # loss.view(anchor_count, batch_size).mean() == mean over the valid anchor rows
    # (padded rows are NaN by construction and are sliced off here).
    return jnp.mean(per_row[:na, 0])


def _supcon_ref(features, labels=None, mask=None, tau=0.07,
                contrast_mode="all", base_temperature=0.07):
    """Pure-JAX mirror of the PyTorch Self_SupConLoss.forward (correctness check)."""
    if features.ndim > 3:
        features = features.reshape(features.shape[0], features.shape[1], -1)
    bsz, n_views = features.shape[0], features.shape[1]
    if labels is None and mask is None:
        mask = jnp.eye(bsz, dtype=jnp.float32)
    elif labels is not None:
        labels = jnp.asarray(labels).reshape(-1, 1)
        mask = (labels == labels.T).astype(jnp.float32)
    else:
        mask = jnp.asarray(mask, jnp.float32)
    contrast_count = n_views
    contrast_feature = jnp.transpose(features, (1, 0, 2)).reshape(n_views * bsz, -1)
    if contrast_mode == "one":
        anchor_feature = features[:, 0]
        anchor_count = 1
    else:
        anchor_feature = contrast_feature
        anchor_count = contrast_count
    adc = (anchor_feature @ contrast_feature.T) / tau
    logits = adc - jnp.max(adc, axis=1, keepdims=True)
    mask = jnp.tile(mask, (anchor_count, contrast_count))
    na, nc = anchor_count * bsz, contrast_count * bsz
    logits_mask = 1.0 - (jnp.arange(na)[:, None] == jnp.arange(nc)[None, :]).astype(jnp.float32)
    mask = mask * logits_mask
    exp_logits = jnp.exp(logits) * logits_mask
    log_prob = logits - jnp.log(jnp.sum(exp_logits, axis=1, keepdims=True))
    mean_log_prob_pos = jnp.sum(mask * log_prob, axis=1) / jnp.sum(mask, axis=1)
    loss = -(tau / base_temperature) * mean_log_prob_pos
    return jnp.mean(loss)


if __name__ == "__main__":
    key = jax.random.PRNGKey(0)
    k1, k2 = jax.random.split(key)

    # Case 1: SimCLR-style unsupervised (labels=None, mask=None), contrast_mode='all'.
    bsz, n_views, dfeat = 8, 2, 32
    feats = jax.random.normal(k1, (bsz, n_views, dfeat), dtype=jnp.float32)
    feats = feats / jnp.linalg.norm(feats, axis=-1, keepdims=True)
    ref1 = _supcon_ref(feats)
    loss1 = jax.block_until_ready(self_supcon_loss(feats, compute_dtype=jnp.float32))
    assert jnp.allclose(loss1, ref1, rtol=2e-3, atol=2e-3), (loss1, ref1)
    loss1_fast = jax.block_until_ready(self_supcon_loss(feats))  # default bf16 MXU path
    assert jnp.allclose(loss1_fast, ref1, rtol=5e-2, atol=5e-2), (loss1_fast, ref1)

    # Case 2: supervised labels, explicit tiles forcing a multi-tile grid with
    # row/col padding (exercises online-max accumulation + padded-column folding).
    bsz2, n_views2, d2 = 48, 3, 24
    feats2 = jax.random.normal(k2, (bsz2, n_views2, d2), dtype=jnp.float32)
    feats2 = feats2 / jnp.linalg.norm(feats2, axis=-1, keepdims=True)
    labels2 = jnp.arange(bsz2, dtype=jnp.int32) % 6
    ref2 = _supcon_ref(feats2, labels=labels2)
    loss2 = jax.block_until_ready(
        self_supcon_loss(feats2, labels=labels2, block_m=64, block_n=128,
                         compute_dtype=jnp.float32))
    assert jnp.allclose(loss2, ref2, rtol=2e-3, atol=2e-3), (loss2, ref2)
    loss2_fast = jax.block_until_ready(self_supcon_loss(feats2, labels=labels2))
    assert jnp.allclose(loss2_fast, ref2, rtol=5e-2, atol=5e-2), (loss2_fast, ref2)

    # Case 3: contrast_mode='one' (anchor rows != contrast rows).
    ref3 = _supcon_ref(feats, contrast_mode="one")
    loss3 = jax.block_until_ready(
        self_supcon_loss(feats, contrast_mode="one", compute_dtype=jnp.float32))
    assert jnp.allclose(loss3, ref3, rtol=2e-3, atol=2e-3), (loss3, ref3)

    # Case 4: user-supplied arbitrary mask path (streamed bf16 tiled mask).
    mask2 = (labels2[:, None] == labels2[None, :]).astype(jnp.float32)
    ref4 = _supcon_ref(feats2, mask=mask2)
    loss4 = jax.block_until_ready(
        self_supcon_loss(feats2, mask=mask2, compute_dtype=jnp.float32))
    assert jnp.allclose(loss4, ref4, rtol=2e-3, atol=2e-3), (loss4, ref4)

    print("KERNEL_OK")
</pallas_src>

<mosaic_0001>
module attributes {stable_mosaic.version = 11 : i64} {
  func.func @_supcon_labels_kernel(%arg0: i32, %arg1: i32, %arg2: memref<16x1xi32, #tpu.memory_space<vmem>>, %arg3: memref<1x128xi32, #tpu.memory_space<vmem>>, %arg4: memref<16x128xf32, #tpu.memory_space<vmem>>, %arg5: memref<128x128xf32, #tpu.memory_space<vmem>>, %arg6: memref<16x1xf32, #tpu.memory_space<vmem>>, %arg7: memref<16x1xf32, #tpu.memory_space<vmem>>, %arg8: memref<16x1xf32, #tpu.memory_space<vmem>>, %arg9: memref<16x1xf32, #tpu.memory_space<vmem>>, %arg10: memref<16x1xf32, #tpu.memory_space<vmem>>) attributes {dimension_semantics = [#tpu.dimension_semantics<parallel>, #tpu.dimension_semantics<arbitrary>], iteration_bounds = array<i64: 1, 1>, scalar_prefetch = 0 : i64, scratch_operands = 4 : i64, tpu.core_type = #tpu.core_type<tc>, window_params = [{transform_indices = @transform_0, window_bounds = array<i64: 16, 1>}, {transform_indices = @transform_1, window_bounds = array<i64: 1, 128>}, {transform_indices = @transform_2, window_bounds = array<i64: 16, 128>}, {transform_indices = @transform_3, window_bounds = array<i64: 128, 128>}, {transform_indices = @transform_4, window_bounds = array<i64: 16, 1>}]} {
    %c0 = arith.constant 0 : index
    %c0_0 = arith.constant 0 : index
    %0 = vector.load %arg4[%c0, %c0_0] : memref<16x128xf32, #tpu.memory_space<vmem>>, vector<16x128xf32>
    %c0_1 = arith.constant 0 : index
    %c0_2 = arith.constant 0 : index
    %1 = vector.load %arg5[%c0_1, %c0_2] : memref<128x128xf32, #tpu.memory_space<vmem>>, vector<128x128xf32>
    %cst = arith.constant dense<0.000000e+00> : vector<16x128xf32>
    %2 = tpu.matmul %0, %1, %cst {dimension_numbers = #tpu.dot_dimension_numbers<[1], [1], [0], [0], [0, 0, 1, 0], [], []>} : vector<16x128xf32>, vector<128x128xf32>, vector<16x128xf32> -> vector<16x128xf32>
    %cst_3 = arith.constant 14.2857141 : f32
    %3 = vector.broadcast %cst_3 : f32 to vector<16x128xf32>
    %4 = arith.mulf %2, %3 : vector<16x128xf32>
    %c16_i32 = arith.constant 16 : i32
    %5 = arith.muli %arg0, %c16_i32 : i32
    %6 = tpu.iota {dimensions = array<i32: 0>} : vector<16x128xi32>
    %7 = vector.broadcast %5 : i32 to vector<16x128xi32>
    %8 = arith.addi %7, %6 : vector<16x128xi32>
    %c128_i32 = arith.constant 128 : i32
    %9 = arith.muli %arg1, %c128_i32 : i32
    %10 = tpu.iota {dimensions = array<i32: 1>} : vector<16x128xi32>
    %11 = vector.broadcast %9 : i32 to vector<16x128xi32>
    %12 = arith.addi %11, %10 : vector<16x128xi32>
    %13 = arith.cmpi ne, %8, %12 : vector<16x128xi32>
    %c0_4 = arith.constant 0 : index
    %c0_5 = arith.constant 0 : index
    %14 = vector.load %arg2[%c0_4, %c0_5] : memref<16x1xi32, #tpu.memory_space<vmem>>, vector<16x1xi32>
    %c0_6 = arith.constant 0 : index
    %c0_7 = arith.constant 0 : index
    %15 = vector.load %arg3[%c0_6, %c0_7] : memref<1x128xi32, #tpu.memory_space<vmem>>, vector<1x128xi32>
    %16 = vector.broadcast %14 : vector<16x1xi32> to vector<16x128xi32>
    %17 = vector.broadcast %15 : vector<1x128xi32> to vector<16x128xi32>
    %18 = arith.cmpi eq, %16, %17 : vector<16x128xi32>
    %19 = arith.andi %18, %13 : vector<16x128xi1>
    %20 = arith.extui %19 : vector<16x128xi1> to vector<16x128xi32>
    %21 = arith.sitofp %20 : vector<16x128xi32> to vector<16x128xf32>
    %c0_i32 = arith.constant 0 : i32
    %22 = arith.cmpi eq, %arg1, %c0_i32 : i32
    %23 = arith.extui %22 : i1 to i32
    %c0_i32_8 = arith.constant 0 : i32
    %24 = arith.cmpi ne, %23, %c0_i32_8 : i32
    scf.if %24 {
      %cst_32 = arith.constant -1.000000e+30 : f32
      %57 = vector.broadcast %cst_32 : f32 to vector<16x1xf32>
      %c0_33 = arith.constant 0 : index
      %c0_34 = arith.constant 0 : index
      %58 = vector.load %arg7[%c0_33, %c0_34] : memref<16x1xf32, #tpu.memory_space<vmem>>, vector<16x1xf32>
      tpu.vector_store %arg7[%c0_33, %c0_34], %57 {strides = array<i32>} : memref<16x1xf32, #tpu.memory_space<vmem>>, vector<16x1xf32>,
      %cst_35 = arith.constant 0.000000e+00 : f32
      %59 = vector.broadcast %cst_35 : f32 to vector<16x1xf32>
      %c0_36 = arith.constant 0 : index
      %c0_37 = arith.constant 0 : index
      %60 = vector.load %arg8[%c0_36, %c0_37] : memref<16x1xf32, #tpu.memory_space<vmem>>, vector<16x1xf32>
      tpu.vector_store %arg8[%c0_36, %c0_37], %59 {strides = array<i32>} : memref<16x1xf32, #tpu.memory_space<vmem>>, vector<16x1xf32>,
      %cst_38 = arith.constant 0.000000e+00 : f32
      %61 = vector.broadcast %cst_38 : f32 to vector<16x1xf32>
      %c0_39 = arith.constant 0 : index
      %c0_40 = arith.constant 0 : index
      %62 = vector.load %arg9[%c0_39, %c0_40] : memref<16x1xf32, #tpu.memory_space<vmem>>, vector<16x1xf32>
      tpu.vector_store %arg9[%c0_39, %c0_40], %61 {strides = array<i32>} : memref<16x1xf32, #tpu.memory_space<vmem>>, vector<16x1xf32>,
      %cst_41 = arith.constant 0.000000e+00 : f32
      %63 = vector.broadcast %cst_41 : f32 to vector<16x1xf32>
      %c0_42 = arith.constant 0 : index
      %c0_43 = arith.constant 0 : index
      %64 = vector.load %arg10[%c0_42, %c0_43] : memref<16x1xf32, #tpu.memory_space<vmem>>, vector<16x1xf32>
      tpu.vector_store %arg10[%c0_42, %c0_43], %63 {strides = array<i32>} : memref<16x1xf32, #tpu.memory_space<vmem>>, vector<16x1xf32>,
    } else {
    }
    %cst_9 = arith.constant -1.000000e+30 : f32
    %25 = vector.broadcast %cst_9 : f32 to vector<16x128xf32>
    %26 = arith.select %13, %4, %25 : vector<16x128xi1>, vector<16x128xf32>
    %c0_10 = arith.constant 0 : index
    %c0_11 = arith.constant 0 : index
    %27 = vector.load %arg7[%c0_10, %c0_11] : memref<16x1xf32, #tpu.memory_space<vmem>>, vector<16x1xf32>
    %cst_12 = arith.constant dense<0xFF800000> : vector<16xf32>
    %28 = vector.multi_reduction <maximumf>, %26, %cst_12 [1] : vector<16x128xf32> to vector<16xf32>
    %29 = vector.shape_cast %28 : vector<16xf32> to vector<16x1xf32>
    %30 = arith.maximumf %27, %29 : vector<16x1xf32>
    %31 = arith.subf %27, %30 : vector<16x1xf32>
    %32 = math.exp %31 : vector<16x1xf32>
    %c0_13 = arith.constant 0 : index
    %c0_14 = arith.constant 0 : index
    %33 = vector.load %arg8[%c0_13, %c0_14] : memref<16x1xf32, #tpu.memory_space<vmem>>, vector<16x1xf32>
    %34 = arith.mulf %32, %33 : vector<16x1xf32>
    %35 = vector.broadcast %30 : vector<16x1xf32> to vector<16x128xf32>
    %36 = arith.subf %26, %35 : vector<16x128xf32>
    %37 = math.exp %36 : vector<16x128xf32>
    %cst_15 = arith.constant dense<0.000000e+00> : vector<16xf32>
    %38 = vector.multi_reduction <add>, %37, %cst_15 [1] : vector<16x128xf32> to vector<16xf32>
    %39 = vector.shape_cast %38 : vector<16xf32> to vector<16x1xf32>
    %40 = arith.addf %34, %39 : vector<16x1xf32>
    %c0_16 = arith.constant 0 : index
    %c0_17 = arith.constant 0 : index
    %41 = vector.load %arg8[%c0_16, %c0_17] : memref<16x1xf32, #tpu.memory_space<vmem>>, vector<16x1xf32>
    tpu.vector_store %arg8[%c0_16, %c0_17], %40 {strides = array<i32>} : memref<16x1xf32, #tpu.memory_space<vmem>>, vector<16x1xf32>,
    %c0_18 = arith.constant 0 : index
    %c0_19 = arith.constant 0 : index
    %42 = vector.load %arg7[%c0_18, %c0_19] : memref<16x1xf32, #tpu.memory_space<vmem>>, vector<16x1xf32>
    tpu.vector_store %arg7[%c0_18, %c0_19], %30 {strides = array<i32>} : memref<16x1xf32, #tpu.memory_space<vmem>>, vector<16x1xf32>,
    %c0_20 = arith.constant 0 : index
    %c0_21 = arith.constant 0 : index
    %43 = vector.load %arg9[%c0_20, %c0_21] : memref<16x1xf32, #tpu.memory_space<vmem>>, vector<16x1xf32>
    %44 = arith.mulf %21, %4 : vector<16x128xf32>
    %cst_22 = arith.constant dense<0.000000e+00> : vector<16xf32>
    %45 = vector.multi_reduction <add>, %44, %cst_22 [1] : vector<16x128xf32> to vector<16xf32>
    %46 = vector.shape_cast %45 : vector<16xf32> to vector<16x1xf32>
    %47 = arith.addf %43, %46 : vector<16x1xf32>
    %c0_23 = arith.constant 0 : index
    %c0_24 = arith.constant 0 : index
    %48 = vector.load %arg9[%c0_23, %c0_24] : memref<16x1xf32, #tpu.memory_space<vmem>>, vector<16x1xf32>
    tpu.vector_store %arg9[%c0_23, %c0_24], %47 {strides = array<i32>} : memref<16x1xf32, #tpu.memory_space<vmem>>, vector<16x1xf32>,
    %c0_25 = arith.constant 0 : index
    %c0_26 = arith.constant 0 : index
    %49 = vector.load %arg10[%c0_25, %c0_26] : memref<16x1xf32, #tpu.memory_space<vmem>>, vector<16x1xf32>
    %cst_27 = arith.constant dense<0.000000e+00> : vector<16xf32>
    %50 = vector.multi_reduction <add>, %21, %cst_27 [1] : vector<16x128xf32> to vector<16xf32>
    %51 = vector.shape_cast %50 : vector<16xf32> to vector<16x1xf32>
    %52 = arith.addf %49, %51 : vector<16x1xf32>
    %c0_28 = arith.constant 0 : index
    %c0_29 = arith.constant 0 : index
    %53 = vector.load %arg10[%c0_28, %c0_29] : memref<16x1xf32, #tpu.memory_space<vmem>>, vector<16x1xf32>
    tpu.vector_store %arg10[%c0_28, %c0_29], %52 {strides = array<i32>} : memref<16x1xf32, #tpu.memory_space<vmem>>, vector<16x1xf32>,
    %c0_i32_30 = arith.constant 0 : i32
    %54 = arith.cmpi eq, %arg1, %c0_i32_30 : i32
    %55 = arith.extui %54 : i1 to i32
    %c0_i32_31 = arith.constant 0 : i32
    %56 = arith.cmpi ne, %55, %c0_i32_31 : i32
    scf.if %56 {
      %c0_32 = arith.constant 0 : index
      %c0_33 = arith.constant 0 : index
      %57 = vector.load %arg7[%c0_32, %c0_33] : memref<16x1xf32, #tpu.memory_space<vmem>>, vector<16x1xf32>
      %c0_34 = arith.constant 0 : index
      %c0_35 = arith.constant 0 : index
      %58 = vector.load %arg8[%c0_34, %c0_35] : memref<16x1xf32, #tpu.memory_space<vmem>>, vector<16x1xf32>
      %59 = math.log %58 : vector<16x1xf32>
      %60 = arith.addf %57, %59 : vector<16x1xf32>
      %c0_36 = arith.constant 0 : index
      %c0_37 = arith.constant 0 : index
      %61 = vector.load %arg9[%c0_36, %c0_37] : memref<16x1xf32, #tpu.memory_space<vmem>>, vector<16x1xf32>
      %c0_38 = arith.constant 0 : index
      %c0_39 = arith.constant 0 : index
      %62 = vector.load %arg10[%c0_38, %c0_39] : memref<16x1xf32, #tpu.memory_space<vmem>>, vector<16x1xf32>
      %63 = arith.divf %61, %62 : vector<16x1xf32>
      %64 = arith.subf %63, %60 : vector<16x1xf32>
      %cst_40 = arith.constant -1.000000e+00 : f32
      %65 = vector.broadcast %cst_40 : f32 to vector<16x1xf32>
      %66 = arith.mulf %65, %64 : vector<16x1xf32>
      %c0_41 = arith.constant 0 : index
      %c0_42 = arith.constant 0 : index
      %67 = vector.load %arg6[%c0_41, %c0_42] : memref<16x1xf32, #tpu.memory_space<vmem>>, vector<16x1xf32>
      tpu.vector_store %arg6[%c0_41, %c0_42], %66 {strides = array<i32>} : memref<16x1xf32, #tpu.memory_space<vmem>>, vector<16x1xf32>,
    } else {
    }
    return
  }
  func.func @transform_0(%arg0: i32, %arg1: i32) -> (i32, i32) {
    %c0_i32 = arith.constant 0 : i32
    %c0_i32_0 = arith.constant 0 : i32
    return %arg0, %c0_i32 : i32, i32
  }
  func.func @transform_1(%arg0: i32, %arg1: i32) -> (i32, i32) {
    %c0_i32 = arith.constant 0 : i32
    %c0_i32_0 = arith.constant 0 : i32
    return %c0_i32, %arg1 : i32, i32
  }
  func.func @transform_2(%arg0: i32, %arg1: i32) -> (i32, i32) {
    %c0_i32 = arith.constant 0 : i32
    %c0_i32_0 = arith.constant 0 : i32
    return %arg0, %c0_i32 : i32, i32
  }
  func.func @transform_3(%arg0: i32, %arg1: i32) -> (i32, i32) {
    %c0_i32 = arith.constant 0 : i32
    %c0_i32_0 = arith.constant 0 : i32
    return %arg1, %c0_i32 : i32, i32
  }
  func.func @transform_4(%arg0: i32, %arg1: i32) -> (i32, i32) {
    %c0_i32 = arith.constant 0 : i32
    %c0_i32_0 = arith.constant 0 : i32
    return %arg0, %c0_i32 : i32, i32
  }
}

</mosaic_0001>

<bundles_post_ra>
// kernel: tpu_custom_call.1
= control target key start
LH: loop header
LB: loop body
LE: loop exit
PB: predicated region body
PF: predicated region fallthrough
CT: control target
= control target key end

     0   :  { %9 = vsyncpa [#allocation7], 0  ;;  %s411_s15 = smov [#allocation6]   ;;  %s497_s0 = inlined_call_operand.vmem [shape: s32[16,1], index: 0, kind: input, shape index: {}]   ;;  %s498_s1 = inlined_call_operand.vmem [shape: s32[1,128], index: 1, kind: input, shape index: {}]   ;;  %s499_s2 = inlined_call_operand.vmem [shape: f32[16,128], index: 2, kind: input, shape index: {}]   ;;  %s500_s3 = inlined_call_operand.hbm [shape: f32[128,128], index: 3, kind: input, shape index: {}]   ;;  %s501_s4 = inlined_call_operand.vmem [shape: f32[16,1], index: 4, kind: output, shape index: {}]  }
   0x1   :  { %s21_s16 = sshll.u32 %s411_s15, 4  ;;  %s387_s19 = scalar_lea.hbm %s500_s3, 2048  ;;  %s22_s16 = int_to_ptr.vmem [resolvable:$true] %s21_s16 }
   0x2   :  { %p388_p0 = scmp.ne.s32.totalorder %s500_s3, %s387_s19  ;;  %p391_p1 = scmp.lt.u32.totalorder %s387_s19, %s500_s3 }
   0x4   :  { %p393_p2 = pnand %p391_p1, %p388_p0 }
   0x6   :  { %396 = shalt.err (!%p393_p2)
}
   0x7   :  { %s397_s24 = scalar_lea.vmem %s22_s16, 2048  ;;  %p402_p4 = scmp.lt.s32.totalorder %s22_s16, %s22_s16 }
   0x8   :  { %p398_p3 = scmp.ne.s32.totalorder %s22_s16, %s397_s24  ;;  %p403_p5 = scmp.lt.s32.totalorder %s397_s24, %s397_s24 }
   0xa   :  { %p404_p6 = por %p403_p5, %p402_p4 }
   0xc   :  { %p405_p7 = pnand %p404_p6, %p398_p3 }
   0xe   :  { %408 = shalt.err (!%p405_p7)
}
   0xf   :  { %s412_s25 = smov 128   ;;  %s413_s26 = smov 8  }
  0x10   :  { %27 = dma.hbm_to_vmem [thread:$0]  %s500_s3, 2048, %s22_s16, [#allocation7], %s412_s25, %s412_s25, %s413_s26  }
  0x11   :  { %409 = dma.done.wait [#allocation7], 2048  }
  0x12   :  { %410 = vsyncadd [#allocation7], 4294965248  ;;  %v33_v0 = vld [vmem:[#allocation6] sm:$0xff]  ;;  %v34_v1 = vld [vmem:[#allocation6 + $0x8] sm:$0xff]  ;;  %v414_v26 = vmov 0   ;;  %vm165_vm0 = vcmask 7168   ;;  %v127_v28 = vlaneseq }
  0x13   :  { %v35_v2 = vld [vmem:[#allocation6 + $0x10] sm:$0xff]  ;;  %v331_v3 = vpack.c.bf16 %v34_v1, %v33_v0  ;;  %v36_v4 = vld [vmem:[#allocation6 + $0x18] sm:$0xff]  ;;  %v37_v7 = vld [vmem:[#allocation6 + $0x20] sm:$0xff]  ;;  %370 = vset.pattern.permute.xlu0 %v414_v26  ;;  %369 = vset.pattern.permute.xlu1 %v414_v26  ;;  %v415_v27 = vmov -1e+30   ;;  %v416_v39 = vmov 0.0  }
  0x14   :  { %v335_v5 = vpack.c.bf16 %v36_v4, %v35_v2  ;;  %v31_v6 = vld [vmem:[%s499_s2] sm:$0xff]  ;;  %v38_v8 = vld [vmem:[#allocation6 + $0x28] sm:$0xff]  ;;  %v40_v11 = vld [vmem:[#allocation6 + $0x38] sm:$0xff]  ;;  %166 = vst.msk [vmem:[#allocation2] sm:$0xff] %vm165_vm0, %v415_v27  ;;  %v128_v29 = vshrl.u32 %v127_v28, 7  ;;  %v135_v30 = vand.u32 127, %v127_v28 }
  0x15   :  { %332 = vmatprep.subr.bf16.mxu0 %v331_v3  ;;  %328 = vmatprep.mubr.f32.mxu0 %v31_v6  ;;  %v339_v9 = vpack.c.bf16 %v38_v8, %v37_v7  ;;  %v39_v10 = vld [vmem:[#allocation6 + $0x30] sm:$0xff]  ;;  %v41_v13 = vld [vmem:[#allocation6 + $0x40] sm:$0xff]  ;;  %v42_v14 = vld [vmem:[#allocation6 + $0x48] sm:$0xff]  ;;  %167 = vst.msk [vmem:[#allocation2 + $0x8] sm:$0xff] %vm165_vm0, %v415_v27 }
  0x16   :  { %334 = vmatpush3.bf16.xpose.msra.mxu0 %v331_v3  ;;  %v343_v12 = vpack.c.bf16 %v40_v11, %v39_v10  ;;  %v347_v15 = vpack.c.bf16 %v42_v14, %v41_v13  ;;  %v43_v16 = vld [vmem:[#allocation6 + $0x50] sm:$0xff]  ;;  %v44_v17 = vld [vmem:[#allocation6 + $0x58] sm:$0xff]  ;;  %v45_v19 = vld [vmem:[#allocation6 + $0x60] sm:$0xff]  ;;  %vm138_vm1 = vcmp.ne.s32.totalorder %v128_v29, %v135_v30  ;;  %v129_v33 = vadd.s32 8, %v128_v29  ;;  %168 = vst.msk [vmem:[#allocation3] sm:$0xff] %vm165_vm0, %v416_v39 }
  0x17   :  { %336 = vmatprep.subr.bf16.mxu0 %v335_v5  ;;  %v351_v18 = vpack.c.bf16 %v44_v17, %v43_v16  ;;  %v46_v20 = vld [vmem:[#allocation6 + $0x68] sm:$0xff]  ;;  %v47_v22 = vld [vmem:[#allocation6 + $0x70] sm:$0xff]  ;;  %v48_v23 = vld [vmem:[#allocation6 + $0x78] sm:$0xff]  ;;  %169 = vst.msk [vmem:[#allocation3 + $0x8] sm:$0xff] %vm165_vm0, %v416_v39 }
  0x18   :  { %v355_v21 = vpack.c.bf16 %v46_v20, %v45_v19  ;;  %v359_v24 = vpack.c.bf16 %v48_v23, %v47_v22  ;;  %v32_v25 = vld [vmem:[%s499_s2 + $0x8] sm:$0xff]  ;;  %vm139_vm2 = vcmp.ne.s32.totalorder %v129_v33, %v135_v30  ;;  %v140_v38 = vld [vmem:[%s497_s0] sm:$0xff]  ;;  %170 = vst.msk [vmem:[#allocation4] sm:$0xff] %vm165_vm0, %v416_v39  ;;  %171 = vst.msk [vmem:[#allocation4 + $0x8] sm:$0xff] %vm165_vm0, %v416_v39 }
  0x19   :  { %172 = vst.msk [vmem:[#allocation5] sm:$0xff] %vm165_vm0, %v416_v39  ;;  %173 = vst.msk [vmem:[#allocation5 + $0x8] sm:$0xff] %vm165_vm0, %v416_v39  ;;  %v141_v48 = vld [vmem:[%s497_s0 + $0x8] sm:$0xff]  ;;  %v275_v49 = vld [vmem:[%s498_s1] ss:$0 sm:$0xff] }
  0x1b   :  { %v176_v40 = vld [vmem:[#allocation2] sm:$0xff] }
  0x1c   :  { %v177_v43 = vld [vmem:[#allocation2 + $0x8] sm:$0xff] }
  0x1d   :  { %v190_v10 = vld [vmem:[#allocation3] sm:$0xff] }
  0x1e   :  { %338 = vmatpush3.bf16.xpose.msra.mxu0 %v335_v5  ;;  %v191_v6 = vld [vmem:[#allocation3 + $0x8] sm:$0xff] }
  0x1f   :  { %340 = vmatprep.subr.bf16.mxu0 %v339_v9  ;;  %v221_v19 = vld [vmem:[#allocation4] sm:$0xff] }
  0x20   :  { %v233_v0 = vld [vmem:[#allocation5] sm:$0xff] }
  0x26   :  { %342 = vmatpush3.bf16.xpose.msra.mxu0 %v339_v9 }
  0x27   :  { %344 = vmatprep.subr.bf16.mxu0 %v343_v12 }
  0x2e   :  { %346 = vmatpush3.bf16.xpose.msra.mxu0 %v343_v12 }
  0x2f   :  { %348 = vmatprep.subr.bf16.mxu0 %v347_v15 }
  0x36   :  { %350 = vmatpush3.bf16.xpose.msra.mxu0 %v347_v15  ;;  %v234_v15 = vld [vmem:[#allocation5 + $0x8] sm:$0xff] }
  0x37   :  { %352 = vmatprep.subr.bf16.mxu0 %v351_v18 }
  0x3e   :  { %354 = vmatpush3.bf16.xpose.msra.mxu0 %v351_v18 }
  0x3f   :  { %356 = vmatprep.subr.bf16.mxu0 %v355_v21 }
  0x46   :  { %358 = vmatpush3.bf16.xpose.msra.mxu0 %v355_v21 }
  0x47   :  { %360 = vmatprep.subr.bf16.mxu0 %v359_v24 }
  0x4e   :  { %362 = vmatpush3.bf16.xpose.msra.mxu0 %v359_v24  ;;  %v222_v24 = vld [vmem:[#allocation4 + $0x8] sm:$0xff] }
  0x55   :  { %329 = vmatmul.mubr.f32.vlgmr.msra.gmra.mrb[0].mxu0 %v32_v25 }
 0x128   :  { %v330_v31 = vpop.f32.mrb[0].mxu0 }
 0x129   :  { %v115_v32 = vpop.f32.mrb[1].mxu0  ;;  %v125_v35 = vmul.f32 14.285714, %v330_v31 }
 0x12a   :  { %v124_v34 = vmul.f32 14.285714, %v115_v32 }
 0x12b   :  { %v175_v37 = vsel %vm139_vm2, %v125_v35, -1e+30 }
 0x12c   :  { %v174_v36 = vsel %vm138_vm1, %v124_v34, -1e+30 }
 0x12d   :  { %178 = vmax.xlane.f32.xlu0 %v174_v36 }
 0x131   :  { %180 = vmax.xlane.f32.xlu0 %v175_v37 }
 0x147   :  { %144 = vperm.xlu0 %370, %v140_v38  }
 0x1ba   :  { %v179_v41 = vpop.xlane.xlu0 %178 }
 0x1bb   :  { %v182_v42 = vmax.f32 %v176_v40, %v179_v41 }
 0x1bd   :  { %v184_v44 = vsub.f32 %v176_v40, %v182_v42  ;;  %219 = vst.msk [vmem:[#allocation2] sm:$0xff] %vm165_vm0, %v182_v42  ;;  %196 = vperm.xlu1 %369, %v182_v42  }
 0x1be   :  { %v181_v45 = vpop.xlane.xlu0 %180 }
 0x1bf   :  { %v183_v46 = vmax.f32 %v177_v43, %v181_v45  ;;  %v186_v4 = vmul.f32 1.442695, %v184_v44 }
 0x1c1   :  { %v185_v47 = vsub.f32 %v177_v43, %v183_v46  ;;  %220 = vst.msk [vmem:[#allocation2 + $0x8] sm:$0xff] %vm165_vm0, %v183_v46  ;;  %201 = vperm.xlu1 %369, %v183_v46  }
 0x1c3   :  { %v188_v3 = vmul.f32 1.442695, %v185_v47 }
 0x1c5   :  { %147 = vperm.xlu1 %369, %v141_v48  }
 0x1c6   :  { %v145_v50 = vpop.permute.xlu0 %144 }
 0x1c7   :  { %vm153_vm3 = vcmp.eq.s32.totalorder %v145_v50, %v275_v49 }
 0x1c8   :  { %vm155_vm4 = vmand %vm153_vm3, %vm138_vm1  ;;  %v247_v38 = vld [vmem:[#allocation2 + $0x8] sm:$0xff] }
 0x1c9   :  { %v276_v51 = vsel %vm155_vm4, 1.0, %v416_v39 }
 0x1ca   :  { %235 = vadd.xlane.f32.xlu0 %v276_v51  ;;  %v223_v62 = vmul.f32 %v276_v51, %v124_v34  ;;  %v246_v34 = vld [vmem:[#allocation2] sm:$0xff] }
 0x23c   :  { %v197_v52 = vpop.permute.xlu1 %196 }
 0x23d   :  { %v204_v54 = vsub.f32 %v174_v36, %v197_v52 }
 0x23f   :  { %v206_v57 = vmul.f32 1.442695, %v204_v54 }
 0x240   :  { %v202_v53 = vpop.permute.xlu1 %201 }
 0x241   :  { %v205_v55 = vsub.f32 %v175_v37, %v202_v53 }
 0x243   :  { %v208_v56 = vmul.f32 1.442695, %v205_v55 }
 0x244   :  { %v148_v58 = vpop.permute.xlu1 %147 }
 0x245   :  { %371 = vpow2.f32 %v208_v56  ;;  %vm154_vm5 = vcmp.eq.s32.totalorder %v148_v58, %v275_v49 }
 0x246   :  { %373 = vpow2.f32 %v206_v57  ;;  %vm156_vm6 = vmand %vm154_vm5, %vm139_vm2 }
 0x247   :  { %v277_v61 = vsel %vm156_vm6, 1.0, %v416_v39  ;;  %375 = vpow2.f32 %v188_v3 }
 0x248   :  { %v224_v63 = vmul.f32 %v277_v61, %v125_v35  ;;  %377 = vpow2.f32 %v186_v4 }
 0x24f   :  { %v372_v59 = vpop.eup %371 }
 0x250   :  { %212 = vadd.xlane.f32.xlu1 %v372_v59  ;;  %v374_v60 = vpop.eup %373 }
 0x251   :  { %v376_v5 = vpop.eup %375 }
 0x252   :  { %v193_v7 = vmul.f32 %v376_v5, %v191_v6  ;;  %v378_v8 = vpop.eup %377 }
 0x253   :  { %v192_v12 = vmul.f32 %v378_v8, %v190_v10 }
 0x254   :  { %210 = vadd.xlane.f32.xlu1 %v374_v60 }
 0x257   :  { %v236_v1 = vpop.xlane.xlu0 %235 }
 0x258   :  { %237 = vadd.xlane.f32.xlu1 %v277_v61  ;;  %v239_v2 = vadd.f32 %v236_v1, %v233_v0 }
 0x25a   :  { %241 = vst.msk [vmem:[#allocation5] sm:$0xff] %vm165_vm0, %v239_v2 }
 0x25c   :  { %225 = vadd.xlane.f32.xlu1 %v223_v62 }
 0x260   :  { %227 = vadd.xlane.f32.xlu1 %v224_v63 }
 0x261   :  { %v258_v20 = vld [vmem:[#allocation5] sm:$0xff] }
 0x2dd   :  { %v213_v9 = vpop.xlane.xlu1 %212 }
 0x2de   :  { %v215_v11 = vadd.f32 %v213_v9, %v193_v7 }
 0x2e0   :  { %218 = vst.msk [vmem:[#allocation3 + $0x8] sm:$0xff] %vm165_vm0, %v215_v11 }
 0x2e1   :  { %v211_v13 = vpop.xlane.xlu1 %210 }
 0x2e2   :  { %v214_v14 = vadd.f32 %v211_v13, %v192_v12 }
 0x2e4   :  { %217 = vst.msk [vmem:[#allocation3] sm:$0xff] %vm165_vm0, %v214_v14 }
 0x2e5   :  { %v238_v16 = vpop.xlane.xlu1 %237 }
 0x2e6   :  { %v240_v17 = vadd.f32 %v238_v16, %v234_v15 }
 0x2e7   :  { %v249_v18 = vld [vmem:[#allocation3 + $0x8] sm:$0xff] }
 0x2e8   :  { %242 = vst.msk [vmem:[#allocation5 + $0x8] sm:$0xff] %vm165_vm0, %v240_v17  ;;  %379 = vlog2.f32 %v249_v18 }
 0x2e9   :  { %v226_v21 = vpop.xlane.xlu1 %225  ;;  %381 = vrcp.f32 %v258_v20 }
 0x2ea   :  { %v229_v22 = vadd.f32 %v226_v21, %v221_v19 }
 0x2eb   :  { %v248_v23 = vld [vmem:[#allocation3] sm:$0xff] }
 0x2ec   :  { %383 = vlog2.f32 %v248_v23  ;;  %231 = vst.msk [vmem:[#allocation4] sm:$0xff] %vm165_vm0, %v229_v22 }
 0x2ed   :  { %v228_v25 = vpop.xlane.xlu1 %227 }
 0x2ee   :  { %v230_v26 = vadd.f32 %v228_v25, %v222_v24 }
 0x2ef   :  { %v259_v27 = vld [vmem:[#allocation5 + $0x8] sm:$0xff] }
 0x2f0   :  { %385 = vrcp.f32 %v259_v27  ;;  %232 = vst.msk [vmem:[#allocation4 + $0x8] sm:$0xff] %vm165_vm0, %v230_v26 }
 0x2f2   :  { %v380_v28 = vpop.eup %379 }
 0x2f3   :  { %v382_v29 = vpop.eup %381  ;;  %v256_v31 = vld [vmem:[#allocation4] sm:$0xff]  ;;  %v253_v32 = vmul.f32 0.6931472, %v380_v28 }
 0x2f4   :  { %v261_v36 = vmul.f32 %v382_v29, %v256_v31 }
 0x2f5   :  { %v255_v41 = vadd.f32 %v253_v32, %v247_v38 }
 0x2f6   :  { %v384_v30 = vpop.eup %383 }
 0x2f7   :  { %v251_v33 = vmul.f32 0.6931472, %v384_v30  ;;  %v257_v39 = vld [vmem:[#allocation4 + $0x8] sm:$0xff] }
 0x2f9   :  { %v254_v35 = vadd.f32 %v251_v33, %v246_v34 }
 0x2fa   :  { %v386_v37 = vpop.eup %385 }
 0x2fb   :  { %v264_v40 = vsub.f32 %v261_v36, %v254_v35  ;;  %v263_v42 = vmul.f32 %v386_v37, %v257_v39 }
 0x2fd   :  { %v266_v43 = vmul.f32 -1.0, %v264_v40  ;;  %v265_v44 = vsub.f32 %v263_v42, %v255_v41 }
 0x2ff   :  { %268 = vst.msk [vmem:[%s501_s4] sm:$0xff] %vm165_vm0, %v266_v43  ;;  %v267_v45 = vmul.f32 -1.0, %v265_v44 }
 0x301   :  { %269 = vst.msk [vmem:[%s501_s4 + $0x8] sm:$0xff] %vm165_vm0, %v267_v45 }
 0x302   :  { %274 = vsyncpa [#allocation7], 1 }

</bundles_post_ra>
